<compile_context>
chip_gen: v7x
topology: tpu7x:2x2x1
jax: 0.10.0
libtpu: 0.0.40
codegen_flags: <defaults>
</compile_context>

<pallas_src>
import functools

import jax
import jax.numpy as jnp
from jax.experimental import pallas as pl
from jax.experimental.pallas import tpu as pltpu


# ------------------------------ tiled matmul ---------------------------------

def _round_up(a, b):
    return (a + b - 1) // b * b


def _matmul_kernel(x_ref, w_ref, o_ref, acc_ref):
    @pl.when(pl.program_id(2) == 0)
    def _():
        acc_ref[...] = jnp.zeros_like(acc_ref)

    acc_ref[...] += jnp.dot(x_ref[...], w_ref[...],
                            preferred_element_type=jnp.float32)

    @pl.when(pl.program_id(2) == pl.num_programs(2) - 1)
    def _():
        o_ref[...] = acc_ref[...].astype(o_ref.dtype)


def _matmul_bias_kernel(x_ref, w_ref, b_ref, o_ref, acc_ref):
    @pl.when(pl.program_id(2) == 0)
    def _():
        acc_ref[...] = jnp.zeros_like(acc_ref)

    acc_ref[...] += jnp.dot(x_ref[...], w_ref[...],
                            preferred_element_type=jnp.float32)

    @pl.when(pl.program_id(2) == pl.num_programs(2) - 1)
    def _():
        o_ref[...] = (acc_ref[...] + b_ref[...]).astype(o_ref.dtype)


def linear_pallas(x, w, b=None, tm=256, tn=256, tk=256):
    """y = x @ w (+ b), with w already laid out (K, N); b is (N,) or None."""
    M, K = x.shape
    N = w.shape[1]
    # shrink tiles to the (padded) problem, keep (8, 128) alignment
    tm = min(tm, _round_up(M, 8))
    tk = min(tk, _round_up(K, 128))
    tn = min(tn, _round_up(N, 128))
    Mp, Kp, Np = _round_up(M, tm), _round_up(K, tk), _round_up(N, tn)

    xp = jnp.pad(x, ((0, Mp - M), (0, Kp - K)))
    wp = jnp.pad(w, ((0, Kp - K), (0, Np - N)))

    grid = (Mp // tm, Np // tn, Kp // tk)
    x_spec = pl.BlockSpec((tm, tk), lambda i, j, kk: (i, kk))
    w_spec = pl.BlockSpec((tk, tn), lambda i, j, kk: (kk, j))
    o_spec = pl.BlockSpec((tm, tn), lambda i, j, kk: (i, j))
    params = pltpu.CompilerParams(
        dimension_semantics=("parallel", "parallel", "arbitrary"))
    scratch = [pltpu.VMEM((tm, tn), jnp.float32)]

    if b is None:
        out = pl.pallas_call(
            _matmul_kernel,
            out_shape=jax.ShapeDtypeStruct((Mp, Np), jnp.float32),
            grid=grid, in_specs=[x_spec, w_spec], out_specs=o_spec,
            scratch_shapes=scratch, compiler_params=params,
        )(xp, wp)
    else:
        bp = jnp.pad(b.reshape(1, N), ((0, 0), (0, Np - N)))
        b_spec = pl.BlockSpec((1, tn), lambda i, j, kk: (0, j))
        out = pl.pallas_call(
            _matmul_bias_kernel,
            out_shape=jax.ShapeDtypeStruct((Mp, Np), jnp.float32),
            grid=grid, in_specs=[x_spec, w_spec, b_spec], out_specs=o_spec,
            scratch_shapes=scratch, compiler_params=params,
        )(xp, wp, bp)
    return out[:M, :N]


# --------------------------- windowed attention -------------------------------

def _softmax_av(s, v):
    """Row softmax of s (f32) followed by batched (probs @ v)."""
    s = s - jnp.max(s, axis=-1, keepdims=True)
    p = jnp.exp(s)
    inv = pl.reciprocal(jnp.sum(p, axis=-1, keepdims=True), approx=True)  # EUP
    out = jnp.einsum("bpq,bqc->bpc", p, v, preferred_element_type=jnp.float32)
    return out * inv


def _local_attn_kernel(q_ref, k_ref, v_ref, o_ref, *, scale):
    q = q_ref[...]                                   # (TB, P, Ch)
    k = k_ref[...]
    v = v_ref[...]
    s = jnp.einsum("bpc,bqc->bpq", q, k,
                   preferred_element_type=jnp.float32) * scale
    o_ref[...] = _softmax_av(s, v).reshape(o_ref.shape)


def _global_attn_kernel(cg_ref, k_ref, v_ref, o_ref, *, scale):
    k = k_ref[0]                                     # (TB, P, Ch)
    v = v_ref[0]
    # same (P, Ch) query for every window of this batch element: broadcast in
    # VMEM instead of materialising Np copies in HBM.
    q = jnp.broadcast_to(cg_ref[0][None], k.shape)
    s = jnp.einsum("bpc,bqc->bpq", q, k,
                   preferred_element_type=jnp.float32) * scale
    o_ref[0] = _softmax_av(s, v)


def _pick_windows_per_block(n_win, p, ch, target=128, vmem_budget=8 << 20):
    """Windows per grid step: big enough to amortise the ~0.35us step cost and
    sub-KiB DMAs, small enough to stay well under VMEM (conservative for v7x's
    64 MiB), a divisor of n_win, and leaving >= 2 blocks so both v7x cores work."""
    per_win = 4 * (p * p + 4 * p * ch)               # f32 scores + q/k/v/out
    cap = max(1, vmem_budget // (3 * per_win))       # headroom for double-buffering
    tb = max(1, min(target, cap,
                    n_win // 2 if (n_win >= 2 and n_win % 2 == 0) else n_win))
    while n_win % tb:
        tb -= 1
    return tb


def local_attn_pallas(q, k, v, scale):
    """Batched local window attention: q, k, v of shape (B*Np, P, Ch)."""
    n_win, P, Ch = q.shape
    tb = _pick_windows_per_block(n_win, P, Ch)
    grid = (n_win // tb,)
    in_spec = pl.BlockSpec((tb, P, Ch), lambda i: (i, 0, 0))
    kern = functools.partial(_local_attn_kernel, scale=scale)
    params = pltpu.CompilerParams(dimension_semantics=("parallel",))

    def call(lane_dense):
        if lane_dense:
            rows = (tb * P * Ch) // 128
            out_shape = jax.ShapeDtypeStruct((grid[0], rows, 128), jnp.float32)
            out_spec = pl.BlockSpec((1, rows, 128), lambda i: (i, 0, 0))
        else:
            out_shape = jax.ShapeDtypeStruct((n_win, P, Ch), jnp.float32)
            out_spec = in_spec
        return pl.pallas_call(
            kern, out_shape=out_shape, grid=grid,
            in_specs=[in_spec, in_spec, in_spec], out_specs=out_spec,
            compiler_params=params,
        )(q, k, v)

    if (tb * P * Ch) % 128 == 0:
        # Lane-dense output (last dim = 128): unmasked stores instead of Ch-wide
        # masked partial stores.  Fall back if the in-kernel flatten won't lower.
        try:
            out = call(True)
            jax.block_until_ready(out)
            return out.reshape(n_win, P, Ch)
        except Exception:
            pass
    return call(False)


def global_attn_pallas(cg, kp, vp, scale):
    """Global-summary attention: cg (B, P, Ch) attends against every window's
    k/v (B, Np, P, Ch); the query stays VMEM-resident per batch element."""
    B, Np, P, Ch = kp.shape
    tb = _pick_windows_per_block(Np, P, Ch)
    grid = (B, Np // tb)
    cg_spec = pl.BlockSpec((1, P, Ch), lambda b, j: (b, 0, 0))
    kv_spec = pl.BlockSpec((1, tb, P, Ch), lambda b, j: (b, j, 0, 0))
    kern = functools.partial(_global_attn_kernel, scale=scale)
    return pl.pallas_call(
        kern,
        out_shape=jax.ShapeDtypeStruct((B, Np, P, Ch), jnp.float32),
        grid=grid,
        in_specs=[cg_spec, kv_spec, kv_spec],
        out_specs=kv_spec,
        compiler_params=pltpu.CompilerParams(
            dimension_semantics=("parallel", "parallel")),
    )(cg, kp, vp)


# --------------------------- pure-JAX reference ops ---------------------------

def linear_ref(x, w, b=None):
    y = x @ w
    return y if b is None else y + b


def local_attn_ref(q, k, v, scale):
    s = jnp.einsum("bpc,bqc->bpq", q, k) * scale
    p = jax.nn.softmax(s, axis=-1)
    return jnp.einsum("bpq,bqc->bpc", p, v)


def global_attn_ref(cg, kp, vp, scale):
    s = jnp.einsum("bpc,bnqc->bnpq", cg, kp) * scale
    p = jax.nn.softmax(s, axis=-1)
    return jnp.einsum("bnpq,bnqc->bnpc", p, vp)


# --------------------------------- forward ------------------------------------

def patchify(arr, H, W, ps):
    # (B, N, Ch) -> (B, Np, ps*ps, Ch), matching the PyTorch patchify().
    # TODO(synk): fold this window re-order into the attention BlockSpec
    # index_map ((B, H//ps, ps, W//ps, ps, Ch) view + per-window blocks) to
    # remove one HBM round trip per head per tensor.
    B, _, Ch = arr.shape
    a = arr.reshape(B, H // ps, ps, W // ps, ps, Ch)
    a = a.transpose(0, 1, 3, 2, 4, 5)
    return a.reshape(B, (H // ps) * (W // ps), ps * ps, Ch)


def multiscale_attention_forward(params, x, H, W, num_heads, local_region_shape,
                                 linear_fn, attn_fn, gattn_fn):
    B, N, C = x.shape
    Ch = C // num_heads
    scale = Ch ** (-0.5)
    xf = x.reshape(B * N, C)

    # fused q/kv projection: one matmul, no bias (qkv_bias=False)
    qkv = linear_fn(xf, params["qkv_w"], None)            # (B*N, 3C)
    q_lin, kv_lin = qkv[:, :C], qkv[:, C:]

    q = q_lin.reshape(B, N, num_heads, Ch).transpose(0, 2, 1, 3)           # (B,nh,N,Ch)
    kv = kv_lin.reshape(B, N, 2, num_heads, Ch).transpose(2, 0, 3, 1, 4)   # (2,B,nh,N,Ch)
    k, v = kv[0], kv[1]

    head_outs = []
    global_attn = None
    for i in range(num_heads):
        ps = local_region_shape[i]
        qp = patchify(q[:, i], H, W, ps)   # (B, Np, P, Ch)
        kp = patchify(k[:, i], H, W, ps)
        vp = patchify(v[:, i], H, W, ps)
        _, Np, P, _ = qp.shape

        att = attn_fn(qp.reshape(B * Np, P, Ch),
                      kp.reshape(B * Np, P, Ch),
                      vp.reshape(B * Np, P, Ch),
                      scale).reshape(B, Np, P, Ch)

        a1 = att.reshape(B, N, Ch)   # stays in patchified token order (as in PyTorch)

        # per-head global summary -> (B, Ch, ps, ps)
        gl = att.transpose(0, 2, 1, 3).mean(axis=2).reshape(B, ps, ps, Ch)
        gl = gl.transpose(0, 3, 1, 2)
        if global_attn is not None:
            prev = global_attn
            r = gl.shape[2] // prev.shape[2]
            if r > 1:
                # F.interpolate(mode='bilinear', align_corners=False) equivalent
                prev = jax.image.resize(
                    prev, (B, Ch, prev.shape[2] * r, prev.shape[3] * r),
                    method="bilinear")
            gl = gl + prev
        global_attn = gl

        if i == num_heads - 1:
            # raw reshape (B, Ch, ps, ps) -> (B, ps*ps, Ch), exactly as PyTorch .reshape
            cg = global_attn.reshape(B, ps * ps, Ch)
            gatt = gattn_fn(cg, kp, vp, scale).reshape(B, N, Ch)
            a1 = a1 + gatt

        head_outs.append(a1)

    fused = jnp.stack(head_outs, axis=1)                    # (B, nh, N, Ch)
    fused = fused.transpose(0, 2, 1, 3).reshape(B, N, C)    # (B, N, C)
    out = linear_fn(fused.reshape(B * N, C), params["proj_w"], params["proj_b"])
    # attn_drop / proj_drop are p=0.0 -> identity
    return out.reshape(B, N, C)


# ----------------------------------- main --------------------------------------

if __name__ == "__main__":
    B, H, W = 2, 8, 8
    dim = 16
    num_heads = 2
    local_region_shape = [2, 4]          # len == num_heads, sizes divide H and W
    N = H * W

    key = jax.random.PRNGKey(0)
    kx, kq, kkv, kpj, kb = jax.random.split(key, 5)
    x = jax.random.normal(kx, (B, N, dim), jnp.float32)

    # deterministic synthetic parameters (trunc_normal std=0.02 -> normal*0.02),
    # stored in PyTorch (out, in) layout then pre-transposed / fused once.
    q_w = 0.02 * jax.random.normal(kq, (dim, dim), jnp.float32)
    kv_w = 0.02 * jax.random.normal(kkv, (2 * dim, dim), jnp.float32)
    proj_w = 0.02 * jax.random.normal(kpj, (dim, dim), jnp.float32)
    proj_b = 0.01 * jax.random.normal(kb, (dim,), jnp.float32)

    params = {
        "qkv_w": jnp.concatenate([q_w, kv_w], axis=0).T,   # (C, 3C) fused q/kv
        "proj_w": proj_w.T,                                # (C, C)
        "proj_b": proj_b,                                  # (C,)
    }

    out_pallas = multiscale_attention_forward(
        params, x, H, W, num_heads, local_region_shape,
        linear_pallas, local_attn_pallas, global_attn_pallas)
    out_pallas = jax.block_until_ready(out_pallas)

    out_ref = multiscale_attention_forward(
        params, x, H, W, num_heads, local_region_shape,
        linear_ref, local_attn_ref, global_attn_ref)
    out_ref = jax.block_until_ready(out_ref)

    assert out_pallas.shape == (B, N, dim)
    max_diff = float(jnp.max(jnp.abs(out_pallas - out_ref)))
    # tolerance covers the approximate EUP reciprocal in the softmax denominator
    assert jnp.allclose(out_pallas, out_ref, atol=2e-3, rtol=2e-3), max_diff
    print("KERNEL_OK")
</pallas_src>

<mosaic_0001>
module attributes {stable_mosaic.version = 11 : i64} {
  func.func @_matmul_kernel(%arg0: i32, %arg1: i32, %arg2: i32, %arg3: memref<128x128xf32, #tpu.memory_space<vmem>>, %arg4: memref<128x128xf32, #tpu.memory_space<vmem>>, %arg5: memref<128x128xf32, #tpu.memory_space<vmem>>, %arg6: memref<128x128xf32, #tpu.memory_space<vmem>>) attributes {dimension_semantics = [#tpu.dimension_semantics<parallel>, #tpu.dimension_semantics<parallel>, #tpu.dimension_semantics<arbitrary>], iteration_bounds = array<i64: 1, 1, 1>, scalar_prefetch = 0 : i64, scratch_operands = 1 : i64, tpu.core_type = #tpu.core_type<tc>, window_params = [{transform_indices = @transform_0, window_bounds = array<i64: 128, 128>}, {transform_indices = @transform_1, window_bounds = array<i64: 128, 128>}, {transform_indices = @transform_2, window_bounds = array<i64: 128, 128>}]} {
    %c0_i32 = arith.constant 0 : i32
    %0 = arith.cmpi eq, %arg2, %c0_i32 : i32
    %1 = arith.extui %0 : i1 to i32
    %c0_i32_0 = arith.constant 0 : i32
    %2 = arith.cmpi ne, %1, %c0_i32_0 : i32
    scf.if %2 {
      %cst_10 = arith.constant 0.000000e+00 : f32
      %12 = vector.broadcast %cst_10 : f32 to vector<128x128xf32>
      %c0_11 = arith.constant 0 : index
      %c0_12 = arith.constant 0 : index
      %13 = vector.load %arg6[%c0_11, %c0_12] : memref<128x128xf32, #tpu.memory_space<vmem>>, vector<128x128xf32>
      tpu.vector_store %arg6[%c0_11, %c0_12], %12 {strides = array<i32>} : memref<128x128xf32, #tpu.memory_space<vmem>>, vector<128x128xf32>,
    } else {
    }
    %c0 = arith.constant 0 : index
    %c0_1 = arith.constant 0 : index
    %3 = vector.load %arg6[%c0, %c0_1] : memref<128x128xf32, #tpu.memory_space<vmem>>, vector<128x128xf32>
    %c0_2 = arith.constant 0 : index
    %c0_3 = arith.constant 0 : index
    %4 = vector.load %arg3[%c0_2, %c0_3] : memref<128x128xf32, #tpu.memory_space<vmem>>, vector<128x128xf32>
    %c0_4 = arith.constant 0 : index
    %c0_5 = arith.constant 0 : index
    %5 = vector.load %arg4[%c0_4, %c0_5] : memref<128x128xf32, #tpu.memory_space<vmem>>, vector<128x128xf32>
    %cst = arith.constant dense<0.000000e+00> : vector<128x128xf32>
    %6 = tpu.matmul %4, %5, %cst {dimension_numbers = #tpu.dot_dimension_numbers<[1], [0], [0], [1], [0, 0, 1, 1], [], []>} : vector<128x128xf32>, vector<128x128xf32>, vector<128x128xf32> -> vector<128x128xf32>
    %7 = arith.addf %3, %6 : vector<128x128xf32>
    %c0_6 = arith.constant 0 : index
    %c0_7 = arith.constant 0 : index
    %8 = vector.load %arg6[%c0_6, %c0_7] : memref<128x128xf32, #tpu.memory_space<vmem>>, vector<128x128xf32>
    tpu.vector_store %arg6[%c0_6, %c0_7], %7 {strides = array<i32>} : memref<128x128xf32, #tpu.memory_space<vmem>>, vector<128x128xf32>,
    %c0_i32_8 = arith.constant 0 : i32
    %9 = arith.cmpi eq, %arg2, %c0_i32_8 : i32
    %10 = arith.extui %9 : i1 to i32
    %c0_i32_9 = arith.constant 0 : i32
    %11 = arith.cmpi ne, %10, %c0_i32_9 : i32
    scf.if %11 {
      %c0_10 = arith.constant 0 : index
      %c0_11 = arith.constant 0 : index
      %12 = vector.load %arg6[%c0_10, %c0_11] : memref<128x128xf32, #tpu.memory_space<vmem>>, vector<128x128xf32>
      %c0_12 = arith.constant 0 : index
      %c0_13 = arith.constant 0 : index
      %13 = vector.load %arg5[%c0_12, %c0_13] : memref<128x128xf32, #tpu.memory_space<vmem>>, vector<128x128xf32>
      tpu.vector_store %arg5[%c0_12, %c0_13], %12 {strides = array<i32>} : memref<128x128xf32, #tpu.memory_space<vmem>>, vector<128x128xf32>,
    } else {
    }
    return
  }
  func.func @transform_0(%arg0: i32, %arg1: i32, %arg2: i32) -> (i32, i32) {
    %c0_i32 = arith.constant 0 : i32
    return %arg0, %arg2 : i32, i32
  }
  func.func @transform_1(%arg0: i32, %arg1: i32, %arg2: i32) -> (i32, i32) {
    %c0_i32 = arith.constant 0 : i32
    return %arg2, %arg1 : i32, i32
  }
  func.func @transform_2(%arg0: i32, %arg1: i32, %arg2: i32) -> (i32, i32) {
    %c0_i32 = arith.constant 0 : i32
    return %arg0, %arg1 : i32, i32
  }
}

</mosaic_0001>

<bundles_post_ra>
// kernel: tpu_custom_call.1
= control target key start
LH: loop header
LB: loop body
LE: loop exit
PB: predicated region body
PF: predicated region fallthrough
CT: control target
= control target key end

     0   :  { %7 = vsyncpa [#allocation4], 0  ;;  %s616_s0 = inlined_call_operand.hbm [shape: f32[128,128], index: 0, kind: input, shape index: {}]   ;;  %s617_s1 = inlined_call_operand.hbm [shape: f32[128,128], index: 1, kind: input, shape index: {}]   ;;  %s618_s2 = inlined_call_operand.hbm [shape: f32[128,128], index: 2, kind: output, shape index: {}]  }
   0x1   :  { %8 = vsyncpa [#allocation7], 0 }
   0x2   :  { %9 = vsyncpa [#allocation5], 0  ;;  %s551_s9 = smov [#allocation3]   ;;  %s479_s13 = scalar_lea.hbm %s616_s0, 2048 }
   0x3   :  { %s15_s10 = sshll.u32 %s551_s9, 4  ;;  %p480_p0 = scmp.ne.s32.totalorder %s616_s0, %s479_s13  ;;  %s16_s10 = int_to_ptr.vmem [resolvable:$true] %s15_s10 }
   0x4   :  { %p483_p1 = scmp.lt.u32.totalorder %s479_s13, %s616_s0 }
   0x6   :  { %p485_p2 = pnand %p483_p1, %p480_p0 }
   0x8   :  { %488 = shalt.err (!%p485_p2)
}
   0x9   :  { %s489_s18 = scalar_lea.vmem %s16_s10, 2048  ;;  %p494_p4 = scmp.lt.s32.totalorder %s16_s10, %s16_s10 }
   0xa   :  { %p490_p3 = scmp.ne.s32.totalorder %s16_s10, %s489_s18  ;;  %p495_p5 = scmp.lt.s32.totalorder %s489_s18, %s489_s18 }
   0xc   :  { %p496_p6 = por %p495_p5, %p494_p4 }
   0xe   :  { %p497_p7 = pnand %p496_p6, %p490_p3 }
  0x10   :  { %500 = shalt.err (!%p497_p7)
}
  0x11   :  { %s552_s19 = smov 128   ;;  %s553_s20 = smov 8  }
  0x12   :  { %21 = dma.hbm_to_vmem [thread:$0]  %s616_s0, 2048, %s16_s10, [#allocation4], %s552_s19, %s552_s19, %s553_s20  }
  0x13   :  { %s554_s23 = smov [#allocation6]   ;;  %s501_s27 = scalar_lea.hbm %s617_s1, 2048 }
  0x14   :  { %s27_s24 = sshll.u32 %s554_s23, 4  ;;  %p502_p8 = scmp.ne.s32.totalorder %s617_s1, %s501_s27  ;;  %s28_s24 = int_to_ptr.vmem [resolvable:$true] %s27_s24 }
  0x15   :  { %p505_p9 = scmp.lt.u32.totalorder %s501_s27, %s617_s1 }
  0x17   :  { %p507_p10 = pnand %p505_p9, %p502_p8 }
  0x19   :  { %510 = shalt.err (!%p507_p10)
}
  0x1a   :  { %s511_s4 = scalar_lea.vmem %s28_s24, 2048  ;;  %p516_p12 = scmp.lt.s32.totalorder %s28_s24, %s28_s24 }
  0x1b   :  { %p512_p11 = scmp.ne.s32.totalorder %s28_s24, %s511_s4  ;;  %p517_p13 = scmp.lt.s32.totalorder %s511_s4, %s511_s4 }
  0x1d   :  { %p518_p0 = por %p517_p13, %p516_p12 }
  0x1f   :  { %p519_p1 = pnand %p518_p0, %p512_p11 }
  0x21   :  { %522 = shalt.err (!%p519_p1)
}
  0x22   :  { %33 = dma.hbm_to_vmem [thread:$0]  %s617_s1, 2048, %s28_s24, [#allocation7], %s552_s19, %s552_s19, %s553_s20  }
  0x23   :  { %545 = dma.done.wait [#allocation4], 2048  }
  0x24   :  { %546 = vsyncadd [#allocation4], 4294965248 }
  0x25   :  { %547 = dma.done.wait [#allocation7], 2048  }
  0x26   :  { %548 = vsyncadd [#allocation7], 4294965248  ;;  %v92_v0 = vld [vmem:[#allocation6] sm:$0xff]  ;;  %v93_v1 = vld [vmem:[#allocation6 + $0x8] sm:$0xff]  ;;  %s555_s1 = smov [#allocation8]  }
  0x27   :  { %v94_v2 = vld [vmem:[#allocation6 + $0x10] sm:$0xff]  ;;  %v426_v3 = vpack.c.bf16 %v93_v1, %v92_v0  ;;  %v95_v4 = vld [vmem:[#allocation6 + $0x18] sm:$0xff]  ;;  %v96_v6 = vld [vmem:[#allocation6 + $0x20] sm:$0xff]  ;;  %s325_s6 = sshll.u32 %s555_s1, 4  ;;  %s326_s6 = int_to_ptr.vmem [resolvable:$true] %s325_s6 }
  0x28   :  { %v430_v5 = vpack.c.bf16 %v95_v4, %v94_v2  ;;  %v97_v7 = vld [vmem:[#allocation6 + $0x28] sm:$0xff]  ;;  %v76_v9 = vld [vmem:[#allocation3] sm:$0xff]  ;;  %v98_v11 = vld [vmem:[#allocation6 + $0x30] sm:$0xff]  ;;  %s523_s7 = scalar_lea.vmem %s326_s6, 2048  ;;  %p528_p3 = scmp.lt.s32.totalorder %s326_s6, %s326_s6 }
  0x29   :  { %427 = vmatprep.subr.bf16.mxu0 %v426_v3  ;;  %458 = vmatprep.subr.bf16.mxu1 %v426_v3  ;;  %v434_v8 = vpack.c.bf16 %v97_v7, %v96_v6  ;;  %v84_v10 = vld [vmem:[#allocation3 + $0x40] sm:$0xff]  ;;  %v99_v12 = vld [vmem:[#allocation6 + $0x38] sm:$0xff]  ;;  %v101_v15 = vld [vmem:[#allocation6 + $0x48] sm:$0xff]  ;;  %p524_p2 = scmp.ne.s32.totalorder %s326_s6, %s523_s7  ;;  %p529_p4 = scmp.lt.s32.totalorder %s523_s7, %s523_s7 }
  0x2a   :  { %429 = vmatpush3.bf16.msra.mxu0 %v426_v3  ;;  %466 = vmatpush3.bf16.msra.mxu1 %v426_v3  ;;  %v438_v13 = vpack.c.bf16 %v99_v12, %v98_v11  ;;  %v100_v14 = vld [vmem:[#allocation6 + $0x40] sm:$0xff]  ;;  %v102_v17 = vld [vmem:[#allocation6 + $0x50] sm:$0xff]  ;;  %v103_v18 = vld [vmem:[#allocation6 + $0x58] sm:$0xff] }
  0x2b   :  { %431 = vmatprep.subr.bf16.mxu0 %v430_v5  ;;  %459 = vmatprep.subr.bf16.mxu1 %v430_v5  ;;  %v442_v16 = vpack.c.bf16 %v101_v15, %v100_v14  ;;  %v446_v19 = vpack.c.bf16 %v103_v18, %v102_v17  ;;  %v104_v20 = vld [vmem:[#allocation6 + $0x60] sm:$0xff]  ;;  %v105_v21 = vld [vmem:[#allocation6 + $0x68] sm:$0xff]  ;;  %v106_v23 = vld [vmem:[#allocation6 + $0x70] sm:$0xff]  ;;  %p530_p5 = por %p529_p4, %p528_p3 }
  0x2c   :  { %402 = vmatprep.mubr.f32.mxu0 %v76_v9  ;;  %414 = vmatprep.mubr.f32.mxu1 %v84_v10  ;;  %v450_v22 = vpack.c.bf16 %v105_v21, %v104_v20  ;;  %v107_v24 = vld [vmem:[#allocation6 + $0x78] sm:$0xff]  ;;  %v77_v26 = vld [vmem:[#allocation3 + $0x8] sm:$0xff]  ;;  %v78_v28 = vld [vmem:[#allocation3 + $0x10] sm:$0xff] }
  0x2d   :  { %v454_v25 = vpack.c.bf16 %v107_v24, %v106_v23  ;;  %v85_v27 = vld [vmem:[#allocation3 + $0x48] sm:$0xff]  ;;  %v86_v29 = vld [vmem:[#allocation3 + $0x50] sm:$0xff]  ;;  %v79_v30 = vld [vmem:[#allocation3 + $0x18] sm:$0xff]  ;;  %p531_p6 = pnand %p530_p5, %p524_p2 }
  0x2e   :  { %433 = vmatpush3.bf16.msra.mxu0 %v430_v5  ;;  %467 = vmatpush3.bf16.msra.mxu1 %v430_v5  ;;  %v87_v31 = vld [vmem:[#allocation3 + $0x58] sm:$0xff]  ;;  %v80_v32 = vld [vmem:[#allocation3 + $0x20] sm:$0xff]  ;;  %v81_v34 = vld [vmem:[#allocation3 + $0x28] sm:$0xff] }
  0x2f   :  { %435 = vmatprep.subr.bf16.mxu0 %v434_v8  ;;  %460 = vmatprep.subr.bf16.mxu1 %v434_v8  ;;  %v88_v33 = vld [vmem:[#allocation3 + $0x60] sm:$0xff]  ;;  %v89_v35 = vld [vmem:[#allocation3 + $0x68] sm:$0xff]  ;;  %v82_v36 = vld [vmem:[#allocation3 + $0x30] sm:$0xff] }
  0x30   :  { %v90_v37 = vld [vmem:[#allocation3 + $0x70] sm:$0xff]  ;;  %v83_v38 = vld [vmem:[#allocation3 + $0x38] sm:$0xff] }
  0x31   :  { %v91_v39 = vld [vmem:[#allocation3 + $0x78] sm:$0xff] }
  0x32   :  { %437 = vmatpush3.bf16.msra.mxu0 %v434_v8  ;;  %468 = vmatpush3.bf16.msra.mxu1 %v434_v8 }
  0x33   :  { %439 = vmatprep.subr.bf16.mxu0 %v438_v13  ;;  %461 = vmatprep.subr.bf16.mxu1 %v438_v13 }
  0x36   :  { %441 = vmatpush3.bf16.msra.mxu0 %v438_v13  ;;  %469 = vmatpush3.bf16.msra.mxu1 %v438_v13 }
  0x37   :  { %443 = vmatprep.subr.bf16.mxu0 %v442_v16  ;;  %462 = vmatprep.subr.bf16.mxu1 %v442_v16 }
  0x3a   :  { %445 = vmatpush3.bf16.msra.mxu0 %v442_v16  ;;  %470 = vmatpush3.bf16.msra.mxu1 %v442_v16 }
  0x3b   :  { %447 = vmatprep.subr.bf16.mxu0 %v446_v19  ;;  %463 = vmatprep.subr.bf16.mxu1 %v446_v19 }
  0x3e   :  { %449 = vmatpush3.bf16.msra.mxu0 %v446_v19  ;;  %471 = vmatpush3.bf16.msra.mxu1 %v446_v19 }
  0x3f   :  { %451 = vmatprep.subr.bf16.mxu0 %v450_v22  ;;  %464 = vmatprep.subr.bf16.mxu1 %v450_v22 }
  0x42   :  { %453 = vmatpush3.bf16.msra.mxu0 %v450_v22  ;;  %472 = vmatpush3.bf16.msra.mxu1 %v450_v22 }
  0x43   :  { %455 = vmatprep.subr.bf16.mxu0 %v454_v25  ;;  %465 = vmatprep.subr.bf16.mxu1 %v454_v25 }
  0x46   :  { %457 = vmatpush3.bf16.msra.mxu0 %v454_v25  ;;  %473 = vmatpush3.bf16.msra.mxu1 %v454_v25 }
  0x49   :  { %403 = vmatmul.mubr.f32.vlgmr.msra.gmra.mrb[0].mxu0 %v77_v26  ;;  %415 = vmatmul.mubr.f32.vlgmr.msra.gmra.mrb[0].mxu1 %v85_v27 }
  0x4a   :  { %405 = vmatprep.mubr.f32.mxu0 %v78_v28  ;;  %417 = vmatprep.mubr.f32.mxu1 %v86_v29 }
  0x4d   :  { %406 = vmatmul.mubr.f32.gmra.mrb[2].mxu0 %v79_v30  ;;  %418 = vmatmul.mubr.f32.gmra.mrb[2].mxu1 %v87_v31 }
  0x4e   :  { %408 = vmatprep.mubr.f32.mxu0 %v80_v32  ;;  %420 = vmatprep.mubr.f32.mxu1 %v88_v33 }
  0x51   :  { %409 = vmatmul.mubr.f32.gmra.mrb[4].mxu0 %v81_v34  ;;  %421 = vmatmul.mubr.f32.gmra.mrb[4].mxu1 %v89_v35 }
  0x52   :  { %411 = vmatprep.mubr.f32.mxu0 %v82_v36  ;;  %423 = vmatprep.mubr.f32.mxu1 %v90_v37 }
  0x55   :  { %412 = vmatmul.mubr.f32.gmra.mrb[6].mxu0 %v83_v38  ;;  %424 = vmatmul.mubr.f32.gmra.mrb[6].mxu1 %v91_v39 }
 0x11c   :  { %v404_v40 = vpop.f32.mrb[0].mxu0  ;;  %v416_v41 = vpop.f32.mrb[0].mxu1 }
 0x11d   :  { %305 = vst [vmem:[#allocation8 + $0x8] sm:$0xff] %v404_v40  ;;  %313 = vst [vmem:[#allocation8 + $0x48] sm:$0xff] %v416_v41  ;;  %v174_v42 = vpop.f32.mrb[1].mxu0  ;;  %v214_v43 = vpop.f32.mrb[1].mxu1 }
 0x11e   :  { %304 = vst [vmem:[#allocation8] sm:$0xff] %v174_v42  ;;  %312 = vst [vmem:[#allocation8 + $0x40] sm:$0xff] %v214_v43 }
 0x120   :  { %v407_v44 = vpop.f32.mrb[2].mxu0  ;;  %v419_v45 = vpop.f32.mrb[2].mxu1 }
 0x121   :  { %307 = vst [vmem:[#allocation8 + $0x18] sm:$0xff] %v407_v44  ;;  %315 = vst [vmem:[#allocation8 + $0x58] sm:$0xff] %v419_v45  ;;  %v184_v46 = vpop.f32.mrb[3].mxu0  ;;  %v224_v47 = vpop.f32.mrb[3].mxu1 }
 0x122   :  { %306 = vst [vmem:[#allocation8 + $0x10] sm:$0xff] %v184_v46  ;;  %314 = vst [vmem:[#allocation8 + $0x50] sm:$0xff] %v224_v47 }
 0x124   :  { %v410_v48 = vpop.f32.mrb[4].mxu0  ;;  %v422_v49 = vpop.f32.mrb[4].mxu1 }
 0x125   :  { %309 = vst [vmem:[#allocation8 + $0x28] sm:$0xff] %v410_v48  ;;  %317 = vst [vmem:[#allocation8 + $0x68] sm:$0xff] %v422_v49  ;;  %v194_v50 = vpop.f32.mrb[5].mxu0  ;;  %v234_v51 = vpop.f32.mrb[5].mxu1 }
 0x126   :  { %308 = vst [vmem:[#allocation8 + $0x20] sm:$0xff] %v194_v50  ;;  %316 = vst [vmem:[#allocation8 + $0x60] sm:$0xff] %v234_v51 }
 0x128   :  { %v413_v52 = vpop.f32.mrb[6].mxu0  ;;  %v425_v53 = vpop.f32.mrb[6].mxu1 }
 0x129   :  { %311 = vst [vmem:[#allocation8 + $0x38] sm:$0xff] %v413_v52  ;;  %319 = vst [vmem:[#allocation8 + $0x78] sm:$0xff] %v425_v53  ;;  %v204_v54 = vpop.f32.mrb[7].mxu0  ;;  %v244_v55 = vpop.f32.mrb[7].mxu1 }
 0x12a   :  { %310 = vst [vmem:[#allocation8 + $0x30] sm:$0xff] %v204_v54  ;;  %318 = vst [vmem:[#allocation8 + $0x70] sm:$0xff] %v244_v55 }
 0x12b   :  { %534 = shalt.err (!%p531_p6)
}
 0x12c   :  { %s535_s10 = scalar_lea.hbm %s618_s2, 2048 }
 0x12d   :  { %p536_p7 = scmp.ne.s32.totalorder %s618_s2, %s535_s10  ;;  %p539_p8 = scmp.lt.u32.totalorder %s535_s10, %s618_s2 }
 0x12f   :  { %p541_p9 = pnand %p539_p8, %p536_p7 }
 0x131   :  { %544 = shalt.err (!%p541_p9)
}
 0x132   :  { %331 = dma.vmem_to_hbm [thread:$0]  %s326_s6, 2048, %s618_s2, [#allocation5], %s552_s19, %s552_s19, %s553_s20  }
 0x133   :  { %549 = dma.done.wait [#allocation5], 2048  }
 0x134   :  { %550 = vsyncadd [#allocation5], 4294965248 }
 0x135   :  { %335 = vsyncpa [#allocation4], 1 }
 0x136   :  { %336 = vsyncpa [#allocation7], 1 }
 0x137   :  { %337 = vsyncpa [#allocation5], 1 }

</bundles_post_ra>
